<compile_context>
chip_gen: v6e
topology: v6e:2x2x1
jax: 0.10.0
libtpu: 0.0.40
codegen_flags: <defaults>
</compile_context>

<pallas_src>
import functools

import jax
import jax.numpy as jnp
from jax.experimental import pallas as pl
from jax.experimental.pallas import tpu as pltpu


def _round_up(x, m):
    return (x + m - 1) // m * m


def _cnn_block_kernel(patches_ref, w_ref, gamma_ref, beta_ref, out_ref,
                      sum_ref, sumsq_ref, *, inv_p):
    # patches_ref: (1, TP, Q_p) bf16   w_ref: (Q_p, C_p) bf16
    # gamma_ref/beta_ref: (1, C_p) f32 out_ref: (1, TP, C_p) f32
    # sum_ref/sumsq_ref: (1, C_p) f32 VMEM scratch (persist across grid steps)
    phase = pl.program_id(1)   # 0: accumulate stats, 1: normalize + activate
    t = pl.program_id(2)       # P-tile index

    # Conv tile as MXU matmul: bf16 operands, f32 accumulation.
    y = jnp.dot(patches_ref[0], w_ref[...],
                preferred_element_type=jnp.float32)            # (TP, C_p) f32

    @pl.when((phase == 0) & (t == 0))
    def _init_stats():
        sum_ref[...] = jnp.zeros_like(sum_ref)
        sumsq_ref[...] = jnp.zeros_like(sumsq_ref)

    @pl.when(phase == 0)
    def _accumulate():
        # Padded P rows come from zero patches -> y rows are exactly 0 and add nothing,
        # so no mask is needed; we just divide by the true P (inv_p) later.
        sum_ref[...] += jnp.sum(y, axis=0, keepdims=True)
        sumsq_ref[...] += jnp.sum(y * y, axis=0, keepdims=True)

    @pl.when((phase == 1) & (t == 0))
    def _finalize_stats():
        mean = sum_ref[...] * inv_p
        var = jnp.maximum(sumsq_ref[...] * inv_p - mean * mean, 0.0)
        scale = gamma_ref[...] * jax.lax.rsqrt(var + 1e-5)     # EUP rsqrt
        sum_ref[...] = scale                                   # reuse scratch: scale
        sumsq_ref[...] = beta_ref[...] - mean * scale          # reuse scratch: shift

    @pl.when(phase == 1)
    def _normalize():
        z = y * sum_ref[...] + sumsq_ref[...]                  # (TP,Cp)*(1,Cp) bcast
        out_ref[0] = jnp.where(z >= 0.0, z, 0.2 * z)           # LeakyReLU(0.2)


@functools.partial(jax.jit, static_argnames=("stride",))
def cnn_block_forward(x, weight, gamma, beta, stride):
    """x: (N, C_in, H, W) NCHW; weight: (C_out, C_in, 4, 4); gamma/beta: (C_out,)."""
    K = weight.shape[-1]
    N, C_in, H, W = x.shape
    C_out = weight.shape[0]
    Ho = (H - K) // stride + 1
    Wo = (W - K) // stride + 1
    P = Ho * Wo
    Q = C_in * K * K

    # im2col built directly in bf16 (halves HBM traffic of the patch tensor vs fp32).
    # TODO(synk): form patches in-kernel from a raw NHWC tile (manual DMA + strided
    # slices) to avoid the K*K HBM duplication entirely.
    xb = x.astype(jnp.bfloat16)
    cols = []
    for ki in range(K):
        for kj in range(K):
            cols.append(xb[:, :, ki:ki + stride * Ho:stride, kj:kj + stride * Wo:stride])
    patches = jnp.stack(cols, axis=2)                  # (N, C, K*K, Ho, Wo)
    patches = patches.reshape(N, Q, P).transpose(0, 2, 1)  # (N, P, Q), q = c*K*K+ki*K+kj

    # Lane-dense padding: Q / C_out -> multiples of 128 (zero-padded, results unchanged).
    Q_p = _round_up(Q, 128)
    C_p = _round_up(C_out, 128)

    # Pick a P tile (multiple of 16 for bf16 sublanes) that keeps VMEM under ~40 MiB
    # (v7x-safe: 64 MiB physical VMEM) while leaving double-buffering alive.
    def _vmem_est(tp):
        patch_buf = 2 * tp * Q_p * 2      # bf16 input tiles, double-buffered
        out_buf = 2 * tp * C_p * 4        # f32 output tiles, double-buffered
        w_buf = 2 * Q_p * C_p * 2         # resident bf16 weight (budget 2x)
        misc = 8 * C_p * 4
        return patch_buf + out_buf + w_buf + misc

    p16 = _round_up(P, 16)
    TP = 16
    for cand in (512, 256, 128, 64, 32, 16):
        if cand <= p16 and _vmem_est(cand) <= 40 * 2**20:
            TP = cand
            break
    P_p = _round_up(P, TP)
    n_pt = P_p // TP
    vmem_limit = int(min(max(32 * 2**20, _vmem_est(TP) + 16 * 2**20), 64 * 2**20))

    patches = jnp.pad(patches, ((0, 0), (0, P_p - P), (0, Q_p - Q)))
    w_mat = weight.reshape(C_out, Q).T.astype(jnp.bfloat16)       # (Q, C_out)
    w_mat = jnp.pad(w_mat, ((0, Q_p - Q), (0, C_p - C_out)))
    gamma2 = jnp.pad(gamma.astype(jnp.float32), (0, C_p - C_out)).reshape(1, C_p)
    beta2 = jnp.pad(beta.astype(jnp.float32), (0, C_p - C_out)).reshape(1, C_p)

    out = pl.pallas_call(
        functools.partial(_cnn_block_kernel, inv_p=1.0 / float(P)),
        out_shape=jax.ShapeDtypeStruct((N, P_p, C_p), jnp.float32),
        grid=(N, 2, n_pt),
        in_specs=[
            pl.BlockSpec((1, TP, Q_p), lambda n, ph, t: (n, t, 0)),
            pl.BlockSpec((Q_p, C_p), lambda n, ph, t: (0, 0)),
            pl.BlockSpec((1, C_p), lambda n, ph, t: (0, 0)),
            pl.BlockSpec((1, C_p), lambda n, ph, t: (0, 0)),
        ],
        # During phase 0 the output block index stays at (n, 0, 0) (never written),
        # so no garbage writebacks happen; phase 1 writes each tile exactly once.
        out_specs=pl.BlockSpec((1, TP, C_p), lambda n, ph, t: (n, t * ph, 0)),
        scratch_shapes=[pltpu.VMEM((1, C_p), jnp.float32),
                        pltpu.VMEM((1, C_p), jnp.float32)],
        compiler_params=pltpu.CompilerParams(
            dimension_semantics=("parallel", "arbitrary", "arbitrary"),
            vmem_limit_bytes=vmem_limit),
    )(patches, w_mat, gamma2, beta2)

    # Strip padding and convert back to NCHW to match the PyTorch module interface.
    # TODO(synk): keep activations in N(HW)C between discriminator blocks to avoid
    # this per-layer transpose round-trip through HBM.
    out = out[:, :P, :C_out]
    return out.transpose(0, 2, 1).reshape(N, C_out, Ho, Wo)


def _reference_forward(x, weight, gamma, beta, stride):
    """Pure-JAX f32 reference (conv + instance-norm + leaky relu) for validation."""
    y = jax.lax.conv_general_dilated(
        x.astype(jnp.float32), weight.astype(jnp.float32),
        window_strides=(stride, stride), padding="VALID",
        dimension_numbers=("NCHW", "OIHW", "NCHW"))
    mean = jnp.mean(y, axis=(2, 3), keepdims=True)
    var = jnp.mean((y - mean) ** 2, axis=(2, 3), keepdims=True)
    y_hat = (y - mean) * jax.lax.rsqrt(var + 1e-5)
    z = gamma.reshape(1, -1, 1, 1) * y_hat + beta.reshape(1, -1, 1, 1)
    return jnp.where(z >= 0, z, 0.2 * z)


if __name__ == "__main__":
    key = jax.random.PRNGKey(0)
    k_x, k_w, k_g, k_b = jax.random.split(key, 4)

    N, C_in, H, W = 2, 4, 16, 16
    C_out, K, stride = 8, 4, 2

    x = jax.random.normal(k_x, (N, C_in, H, W), dtype=jnp.float32)
    weight = 0.1 * jax.random.normal(k_w, (C_out, C_in, K, K), dtype=jnp.float32)
    gamma = 1.0 + 0.1 * jax.random.normal(k_g, (C_out,), dtype=jnp.float32)
    beta = 0.1 * jax.random.normal(k_b, (C_out,), dtype=jnp.float32)

    out = jax.block_until_ready(cnn_block_forward(x, weight, gamma, beta, stride))
    ref = _reference_forward(x, weight, gamma, beta, stride)

    Ho = (H - K) // stride + 1
    Wo = (W - K) // stride + 1
    assert out.shape == (N, C_out, Ho, Wo)
    # bf16 MXU operands (f32 accumulation / f32 norm math) vs. pure-f32 reference.
    assert jnp.allclose(out, ref, atol=2e-2, rtol=2e-2), float(jnp.max(jnp.abs(out - ref)))

    print("KERNEL_OK")
</pallas_src>

<mosaic_0001>
module attributes {stable_mosaic.version = 11 : i64} {
  func.func @_cnn_block_kernel(%arg0: i32, %arg1: i32, %arg2: i32, %arg3: memref<1x64x128xbf16, #tpu.memory_space<vmem>>, %arg4: memref<128x128xbf16, #tpu.memory_space<vmem>>, %arg5: memref<1x128xf32, #tpu.memory_space<vmem>>, %arg6: memref<1x128xf32, #tpu.memory_space<vmem>>, %arg7: memref<1x64x128xf32, #tpu.memory_space<vmem>>, %arg8: memref<1x128xf32, #tpu.memory_space<vmem>>, %arg9: memref<1x128xf32, #tpu.memory_space<vmem>>) attributes {dimension_semantics = [#tpu.dimension_semantics<parallel>, #tpu.dimension_semantics<arbitrary>, #tpu.dimension_semantics<arbitrary>], iteration_bounds = array<i64: 2, 2, 1>, scalar_prefetch = 0 : i64, scratch_operands = 2 : i64, tpu.core_type = #tpu.core_type<tc>, window_params = [{transform_indices = @transform_0, window_bounds = array<i64: 1, 64, 128>}, {pipeline_mode = #tpu.pipeline_mode<synchronous>, transform_indices = @transform_1, window_bounds = array<i64: 128, 128>}, {pipeline_mode = #tpu.pipeline_mode<synchronous>, transform_indices = @transform_2, window_bounds = array<i64: 1, 128>}, {pipeline_mode = #tpu.pipeline_mode<synchronous>, transform_indices = @transform_3, window_bounds = array<i64: 1, 128>}, {transform_indices = @transform_4, window_bounds = array<i64: 1, 64, 128>}]} {
    %c0 = arith.constant 0 : index
    %c0_0 = arith.constant 0 : index
    %c0_1 = arith.constant 0 : index
    %0 = vector.load %arg3[%c0, %c0_0, %c0_1] : memref<1x64x128xbf16, #tpu.memory_space<vmem>>, vector<1x64x128xbf16>
    %1 = vector.shape_cast %0 : vector<1x64x128xbf16> to vector<64x128xbf16>
    %c0_2 = arith.constant 0 : index
    %c0_3 = arith.constant 0 : index
    %2 = vector.load %arg4[%c0_2, %c0_3] : memref<128x128xbf16, #tpu.memory_space<vmem>>, vector<128x128xbf16>
    %cst = arith.constant dense<0.000000e+00> : vector<64x128xf32>
    %3 = tpu.matmul %1, %2, %cst {dimension_numbers = #tpu.dot_dimension_numbers<[1], [0], [0], [1], [0, 0, 1, 1], [], []>} : vector<64x128xbf16>, vector<128x128xbf16>, vector<64x128xf32> -> vector<64x128xf32>
    %c0_i32 = arith.constant 0 : i32
    %4 = arith.cmpi eq, %arg1, %c0_i32 : i32
    %c0_i32_4 = arith.constant 0 : i32
    %5 = arith.cmpi eq, %arg2, %c0_i32_4 : i32
    %6 = arith.andi %4, %5 : i1
    %7 = arith.extui %6 : i1 to i32
    %c0_i32_5 = arith.constant 0 : i32
    %8 = arith.cmpi ne, %7, %c0_i32_5 : i32
    scf.if %8 {
      %cst_12 = arith.constant 0.000000e+00 : f32
      %20 = vector.broadcast %cst_12 : f32 to vector<1x128xf32>
      %c0_13 = arith.constant 0 : index
      %c0_14 = arith.constant 0 : index
      %21 = vector.load %arg8[%c0_13, %c0_14] : memref<1x128xf32, #tpu.memory_space<vmem>>, vector<1x128xf32>
      tpu.vector_store %arg8[%c0_13, %c0_14], %20 {strides = array<i32>} : memref<1x128xf32, #tpu.memory_space<vmem>>, vector<1x128xf32>,
      %cst_15 = arith.constant 0.000000e+00 : f32
      %22 = vector.broadcast %cst_15 : f32 to vector<1x128xf32>
      %c0_16 = arith.constant 0 : index
      %c0_17 = arith.constant 0 : index
      %23 = vector.load %arg9[%c0_16, %c0_17] : memref<1x128xf32, #tpu.memory_space<vmem>>, vector<1x128xf32>
      tpu.vector_store %arg9[%c0_16, %c0_17], %22 {strides = array<i32>} : memref<1x128xf32, #tpu.memory_space<vmem>>, vector<1x128xf32>,
    } else {
    }
    %c0_i32_6 = arith.constant 0 : i32
    %9 = arith.cmpi eq, %arg1, %c0_i32_6 : i32
    %10 = arith.extui %9 : i1 to i32
    %c0_i32_7 = arith.constant 0 : i32
    %11 = arith.cmpi ne, %10, %c0_i32_7 : i32
    scf.if %11 {
      %c0_12 = arith.constant 0 : index
      %c0_13 = arith.constant 0 : index
      %20 = vector.load %arg8[%c0_12, %c0_13] : memref<1x128xf32, #tpu.memory_space<vmem>>, vector<1x128xf32>
      %cst_14 = arith.constant dense<0.000000e+00> : vector<128xf32>
      %21 = vector.multi_reduction <add>, %3, %cst_14 [0] : vector<64x128xf32> to vector<128xf32>
      %22 = vector.shape_cast %21 : vector<128xf32> to vector<1x128xf32>
      %23 = arith.addf %20, %22 : vector<1x128xf32>
      %c0_15 = arith.constant 0 : index
      %c0_16 = arith.constant 0 : index
      %24 = vector.load %arg8[%c0_15, %c0_16] : memref<1x128xf32, #tpu.memory_space<vmem>>, vector<1x128xf32>
      tpu.vector_store %arg8[%c0_15, %c0_16], %23 {strides = array<i32>} : memref<1x128xf32, #tpu.memory_space<vmem>>, vector<1x128xf32>,
      %c0_17 = arith.constant 0 : index
      %c0_18 = arith.constant 0 : index
      %25 = vector.load %arg9[%c0_17, %c0_18] : memref<1x128xf32, #tpu.memory_space<vmem>>, vector<1x128xf32>
      %26 = arith.mulf %3, %3 : vector<64x128xf32>
      %cst_19 = arith.constant dense<0.000000e+00> : vector<128xf32>
      %27 = vector.multi_reduction <add>, %26, %cst_19 [0] : vector<64x128xf32> to vector<128xf32>
      %28 = vector.shape_cast %27 : vector<128xf32> to vector<1x128xf32>
      %29 = arith.addf %25, %28 : vector<1x128xf32>
      %c0_20 = arith.constant 0 : index
      %c0_21 = arith.constant 0 : index
      %30 = vector.load %arg9[%c0_20, %c0_21] : memref<1x128xf32, #tpu.memory_space<vmem>>, vector<1x128xf32>
      tpu.vector_store %arg9[%c0_20, %c0_21], %29 {strides = array<i32>} : memref<1x128xf32, #tpu.memory_space<vmem>>, vector<1x128xf32>,
    } else {
    }
    %c1_i32 = arith.constant 1 : i32
    %12 = arith.cmpi eq, %arg1, %c1_i32 : i32
    %c0_i32_8 = arith.constant 0 : i32
    %13 = arith.cmpi eq, %arg2, %c0_i32_8 : i32
    %14 = arith.andi %12, %13 : i1
    %15 = arith.extui %14 : i1 to i32
    %c0_i32_9 = arith.constant 0 : i32
    %16 = arith.cmpi ne, %15, %c0_i32_9 : i32
    scf.if %16 {
      %c0_12 = arith.constant 0 : index
      %c0_13 = arith.constant 0 : index
      %20 = vector.load %arg8[%c0_12, %c0_13] : memref<1x128xf32, #tpu.memory_space<vmem>>, vector<1x128xf32>
      %cst_14 = arith.constant 0.0204081628 : f32
      %21 = vector.broadcast %cst_14 : f32 to vector<1x128xf32>
      %22 = arith.mulf %20, %21 : vector<1x128xf32>
      %c0_15 = arith.constant 0 : index
      %c0_16 = arith.constant 0 : index
      %23 = vector.load %arg9[%c0_15, %c0_16] : memref<1x128xf32, #tpu.memory_space<vmem>>, vector<1x128xf32>
      %cst_17 = arith.constant 0.0204081628 : f32
      %24 = vector.broadcast %cst_17 : f32 to vector<1x128xf32>
      %25 = arith.mulf %23, %24 : vector<1x128xf32>
      %26 = arith.mulf %22, %22 : vector<1x128xf32>
      %27 = arith.subf %25, %26 : vector<1x128xf32>
      %cst_18 = arith.constant 0.000000e+00 : f32
      %28 = vector.broadcast %cst_18 : f32 to vector<1x128xf32>
      %29 = arith.maximumf %27, %28 : vector<1x128xf32>
      %c0_19 = arith.constant 0 : index
      %c0_20 = arith.constant 0 : index
      %30 = vector.load %arg5[%c0_19, %c0_20] : memref<1x128xf32, #tpu.memory_space<vmem>>, vector<1x128xf32>
      %cst_21 = arith.constant 9.99999974E-6 : f32
      %31 = vector.broadcast %cst_21 : f32 to vector<1x128xf32>
      %32 = arith.addf %29, %31 : vector<1x128xf32>
      %33 = math.rsqrt %32 : vector<1x128xf32>
      %34 = arith.mulf %30, %33 : vector<1x128xf32>
      %c0_22 = arith.constant 0 : index
      %c0_23 = arith.constant 0 : index
      %35 = vector.load %arg8[%c0_22, %c0_23] : memref<1x128xf32, #tpu.memory_space<vmem>>, vector<1x128xf32>
      tpu.vector_store %arg8[%c0_22, %c0_23], %34 {strides = array<i32>} : memref<1x128xf32, #tpu.memory_space<vmem>>, vector<1x128xf32>,
      %c0_24 = arith.constant 0 : index
      %c0_25 = arith.constant 0 : index
      %36 = vector.load %arg6[%c0_24, %c0_25] : memref<1x128xf32, #tpu.memory_space<vmem>>, vector<1x128xf32>
      %37 = arith.mulf %22, %34 : vector<1x128xf32>
      %38 = arith.subf %36, %37 : vector<1x128xf32>
      %c0_26 = arith.constant 0 : index
      %c0_27 = arith.constant 0 : index
      %39 = vector.load %arg9[%c0_26, %c0_27] : memref<1x128xf32, #tpu.memory_space<vmem>>, vector<1x128xf32>
      tpu.vector_store %arg9[%c0_26, %c0_27], %38 {strides = array<i32>} : memref<1x128xf32, #tpu.memory_space<vmem>>, vector<1x128xf32>,
    } else {
    }
    %c1_i32_10 = arith.constant 1 : i32
    %17 = arith.cmpi eq, %arg1, %c1_i32_10 : i32
    %18 = arith.extui %17 : i1 to i32
    %c0_i32_11 = arith.constant 0 : i32
    %19 = arith.cmpi ne, %18, %c0_i32_11 : i32
    scf.if %19 {
      %c0_12 = arith.constant 0 : index
      %c0_13 = arith.constant 0 : index
      %20 = vector.load %arg8[%c0_12, %c0_13] : memref<1x128xf32, #tpu.memory_space<vmem>>, vector<1x128xf32>
      %21 = vector.broadcast %20 : vector<1x128xf32> to vector<64x128xf32>
      %22 = arith.mulf %3, %21 : vector<64x128xf32>
      %c0_14 = arith.constant 0 : index
      %c0_15 = arith.constant 0 : index
      %23 = vector.load %arg9[%c0_14, %c0_15] : memref<1x128xf32, #tpu.memory_space<vmem>>, vector<1x128xf32>
      %24 = vector.broadcast %23 : vector<1x128xf32> to vector<64x128xf32>
      %25 = arith.addf %22, %24 : vector<64x128xf32>
      %cst_16 = arith.constant 0.000000e+00 : f32
      %26 = vector.broadcast %cst_16 : f32 to vector<64x128xf32>
      %27 = arith.cmpf oge, %25, %26 : vector<64x128xf32>
      %cst_17 = arith.constant 2.000000e-01 : f32
      %28 = vector.broadcast %cst_17 : f32 to vector<64x128xf32>
      %29 = arith.mulf %28, %25 : vector<64x128xf32>
      %30 = arith.select %27, %25, %29 : vector<64x128xi1>, vector<64x128xf32>
      %c0_18 = arith.constant 0 : index
      %c0_19 = arith.constant 0 : index
      %c0_20 = arith.constant 0 : index
      %31 = vector.load %arg7[%c0_18, %c0_19, %c0_20] : memref<1x64x128xf32, #tpu.memory_space<vmem>>, vector<1x64x128xf32>
      %32 = vector.shape_cast %31 : vector<1x64x128xf32> to vector<64x128xf32>
      %33 = vector.shape_cast %30 : vector<64x128xf32> to vector<1x64x128xf32>
      tpu.vector_store %arg7[%c0_18, %c0_19, %c0_20], %33 {strides = array<i32>} : memref<1x64x128xf32, #tpu.memory_space<vmem>>, vector<1x64x128xf32>,
    } else {
    }
    return
  }
  func.func @transform_0(%arg0: i32, %arg1: i32, %arg2: i32) -> (i32, i32, i32) {
    %c0_i32 = arith.constant 0 : i32
    %c0_i32_0 = arith.constant 0 : i32
    return %arg0, %arg2, %c0_i32 : i32, i32, i32
  }
  func.func @transform_1(%arg0: i32, %arg1: i32, %arg2: i32) -> (i32, i32) {
    %c0_i32 = arith.constant 0 : i32
    %c0_i32_0 = arith.constant 0 : i32
    %c0_i32_1 = arith.constant 0 : i32
    return %c0_i32, %c0_i32_0 : i32, i32
  }
  func.func @transform_2(%arg0: i32, %arg1: i32, %arg2: i32) -> (i32, i32) {
    %c0_i32 = arith.constant 0 : i32
    %c0_i32_0 = arith.constant 0 : i32
    %c0_i32_1 = arith.constant 0 : i32
    return %c0_i32, %c0_i32_0 : i32, i32
  }
  func.func @transform_3(%arg0: i32, %arg1: i32, %arg2: i32) -> (i32, i32) {
    %c0_i32 = arith.constant 0 : i32
    %c0_i32_0 = arith.constant 0 : i32
    %c0_i32_1 = arith.constant 0 : i32
    return %c0_i32, %c0_i32_0 : i32, i32
  }
  func.func @transform_4(%arg0: i32, %arg1: i32, %arg2: i32) -> (i32, i32, i32) {
    %0 = arith.muli %arg2, %arg1 : i32
    %c0_i32 = arith.constant 0 : i32
    %c0_i32_0 = arith.constant 0 : i32
    return %arg0, %0, %c0_i32 : i32, i32, i32
  }
}

</mosaic_0001>

<bundles_post_ra>
// kernel: cnn_block_forward.1
= control target key start
LH: loop header
LB: loop body
LE: loop exit
PB: predicated region body
PF: predicated region fallthrough
CT: control target
= control target key end

     0   :  { %s850_s15 = smov 0   ;;  %s852_s16 = smov 0   ;;  %s1001_s0 = inlined_call_operand.vmem [shape: bf16[2,64,128], index: 0, kind: input, shape index: {}]   ;;  %s1002_s1 = inlined_call_operand.vmem [shape: bf16[128,128], index: 1, kind: input, shape index: {}]   ;;  %s1003_s2 = inlined_call_operand.vmem [shape: f32[1,128], index: 2, kind: input, shape index: {}]   ;;  %s1004_s3 = inlined_call_operand.vmem [shape: f32[1,128], index: 3, kind: input, shape index: {}]   ;;  %s1005_s4 = inlined_call_operand.vmem [shape: f32[2,64,128], index: 4, kind: output, shape index: {}]  }
   0x1   :  { %s854_s17 = smov 0   ;;  %s856_s18 = smov 0  }
   0x2   :  { %s858_s19 = smov 0  }
   0x3 LB: > { %s29_s20 = sadd.s32 1, %s814_s17  ;;  %s33_s21 = sadd.s32 1, %s818_s18  ;;  %s822_s19 = sphi %s858_s19, %s14_s19   ;;  %s818_s18 = sphi %s856_s18, %s1009_s18   ;;  %s814_s17 = sphi %s854_s17, %s1008_s17   ;;  %s810_s16 = sphi %s852_s16, %s1007_s16   ;;  %s806_s15 = sphi %s850_s15, %s1006_s15  }
   0x4   : > { %p31_p0 = scmp.ge.s32.totalorder %s29_s20, 2  ;;  %p648_p1 = scmp.ge.s32.totalorder %s822_s19, 1 }
   0x5   : > { %p192_p2 = scmp.lt.s32.totalorder %s822_s19, 5 }
   0x6   : > { %s1011_s20 = smov (%p31_p0, %s29_s20), 0  ;;  %s1013_s21 = smov (!%p31_p0, %s33_s21), %s818_s18 }
   0x7   : > { %p193_p3 = pnand %p648_p1, %p192_p2  ;;  %p35_p4 = scmp.ge.s32.totalorder %s1013_s21, 2 }
   0x8   : > { %p228_p5 = scmp.lt.s32.totalorder (!%p193_p3), %s810_s16, 1  ;;  %p411_p6 = scmp.eq.s32.totalorder (!%p193_p3), %s806_s15, 0 }
   0x9   : > { %s1015_s21 = smov (%p35_p4, %s1013_s21), 0  ;;  %196 = sbr.rel (%p193_p3) target bundleno = 341 (0x155), region = 36 }
   0xe   : > { %v770_v0 = vld [vmem:[%s1002_s1 + $0x38] sm:$0xff]   ;;  %v771_v1 = vld [vmem:[%s1002_s1 + $0x30] sm:$0xff]   ;;  %s1017_s16 = smov (!%p228_p5, %s810_s16), 1  ;;  %v772_v2 = vld [vmem:[%s1002_s1 + $0x28] sm:$0xff]   ;;  %v824_v20 = vmov (%p411_p6), 0.0  }
   0xf   : > { %689 = vmatprep.subr.bf16.mxu0 %v770_v0  ;;  %713 = vmatprep.subr.bf16.mxu1 %v770_v0  ;;  %s673_s28 = sshll.u32 %s1017_s16, 5  ;;  %s674_s6 = sshll.u32 %s1017_s16, 6  ;;  %v773_v3 = vld [vmem:[%s1002_s1 + $0x20] sm:$0xff]   ;;  %v774_v6 = vld [vmem:[%s1002_s1 + $0x18] sm:$0xff]   ;;  %v775_v7 = vld [vmem:[%s1002_s1 + $0x10] sm:$0xff]  }
  0x10   : > { %690 = vmatpush3.bf16.msra.mxu0 %v770_v0  ;;  %721 = vmatpush3.bf16.msra.mxu1 %v770_v0  ;;  %s894_s5 = scalar_lea.vmem %s1001_s0, %s673_s28  ;;  %s899_s9 = scalar_lea.vmem %s1005_s4, %s674_s6  ;;  %v776_v8 = vld [vmem:[%s1002_s1 + $0x8] sm:$0xff]   ;;  %v777_v9 = vld [vmem:[%s1002_s1] sm:$0xff]   ;;  %417 = vst [vmem:[#allocation2] sm:$0x1] (%p411_p6), %v824_v20  ;;  %418 = vst [vmem:[#allocation3] sm:$0x1] (%p411_p6), %v824_v20 }
  0x11   : > { %691 = vmatprep.subr.bf16.mxu0 %v771_v1  ;;  %714 = vmatprep.subr.bf16.mxu1 %v771_v1  ;;  %v778_v4 = vld [vmem:[%s894_s5] sm:$0xff]   ;;  %v779_v5 = vld [vmem:[%s894_s5 + $0x10] sm:$0xff]   ;;  %v780_v10 = vld [vmem:[%s894_s5 + $0x8] sm:$0xff]  }
  0x12   : > { %705 = vmatprep.mubr.bf16.mxu0 %v778_v4  ;;  %709 = vmatprep.mubr.bf16.mxu1 %v779_v5  ;;  %v781_v11 = vld [vmem:[%s894_s5 + $0x18] sm:$0xff]  }
  0x14   : > { %692 = vmatpush3.bf16.msra.mxu0 %v771_v1  ;;  %722 = vmatpush3.bf16.msra.mxu1 %v771_v1 }
  0x15   : > { %693 = vmatprep.subr.bf16.mxu0 %v772_v2  ;;  %715 = vmatprep.subr.bf16.mxu1 %v772_v2 }
  0x18   : > { %694 = vmatpush3.bf16.msra.mxu0 %v772_v2  ;;  %723 = vmatpush3.bf16.msra.mxu1 %v772_v2 }
  0x19   : > { %695 = vmatprep.subr.bf16.mxu0 %v773_v3  ;;  %716 = vmatprep.subr.bf16.mxu1 %v773_v3 }
  0x1c   : > { %696 = vmatpush3.bf16.msra.mxu0 %v773_v3  ;;  %724 = vmatpush3.bf16.msra.mxu1 %v773_v3 }
  0x1d   : > { %697 = vmatprep.subr.bf16.mxu0 %v774_v6  ;;  %717 = vmatprep.subr.bf16.mxu1 %v774_v6 }
  0x20   : > { %698 = vmatpush3.bf16.msra.mxu0 %v774_v6  ;;  %725 = vmatpush3.bf16.msra.mxu1 %v774_v6 }
  0x21   : > { %699 = vmatprep.subr.bf16.mxu0 %v775_v7  ;;  %718 = vmatprep.subr.bf16.mxu1 %v775_v7 }
  0x24   : > { %700 = vmatpush3.bf16.msra.mxu0 %v775_v7  ;;  %726 = vmatpush3.bf16.msra.mxu1 %v775_v7 }
  0x25   : > { %701 = vmatprep.subr.bf16.mxu0 %v776_v8  ;;  %719 = vmatprep.subr.bf16.mxu1 %v776_v8 }
  0x28   : > { %702 = vmatpush3.bf16.msra.mxu0 %v776_v8  ;;  %727 = vmatpush3.bf16.msra.mxu1 %v776_v8 }
  0x29   : > { %703 = vmatprep.subr.bf16.mxu0 %v777_v9  ;;  %720 = vmatprep.subr.bf16.mxu1 %v777_v9 }
  0x2c   : > { %704 = vmatpush3.bf16.msra.mxu0 %v777_v9  ;;  %728 = vmatpush3.bf16.msra.mxu1 %v777_v9 }
  0x2f   : > { %706 = vmatmul.mubr.bf16.vlgmr.msra.gmra.mxu0 %v780_v10  ;;  %710 = vmatmul.mubr.bf16.vlgmr.msra.gmra.mxu1 %v781_v11 }
  0xef   : > { %v921_v12 = vpop.f32.mrf.mxu0  ;;  %v923_v13 = vpop.f32.mrf.mxu1 }
  0xf1   : > { %v925_v14 = vpop.f32.mrf.mxu0  ;;  %v927_v15 = vpop.f32.mrf.mxu1  ;;  %416 = sbr.rel (!%p411_p6) target bundleno = 246 (0xf6), region = 40 }
  0xf3   : > { %v929_v16 = vpop.f32.mrf.mxu0  ;;  %v931_v17 = vpop.f32.mrf.mxu1 }
  0xf5   : > { %v933_v18 = vpop.f32.mrf.mxu0  ;;  %v935_v19 = vpop.f32.mrf.mxu1 }
  0xf6 PF: > { %p666_p7 = scmp.ne.s32.totalorder %s806_s15, 0 }
  0xf8   : > { %421 = sbr.rel (%p666_p7) target bundleno = 284 (0x11c), region = 44 }
  0xfd   : > { %v423_v21 = vadd.f32 %v933_v18, %v925_v14  ;;  %v439_v22 = vmul.f32 %v925_v14, %v925_v14  ;;  %v440_v23 = vmul.f32 %v933_v18, %v933_v18  ;;  %v441_v24 = vmul.f32 %v921_v12, %v921_v12  ;;  %v422_v52 = vld [vmem:[#allocation2] sm:$0x1]  ;;  %v438_v55 = vld [vmem:[#allocation3] sm:$0x1] }
  0xfe   : > { %v442_v26 = vmul.f32 %v929_v16, %v929_v16  ;;  %v443_v29 = vmul.f32 %v927_v15, %v927_v15  ;;  %v444_v32 = vmul.f32 %v935_v19, %v935_v19  ;;  %v445_v35 = vmul.f32 %v923_v13, %v923_v13 }
  0xff   : > { %v424_v25 = vadd.f32 %v921_v12, %v423_v21  ;;  %v447_v27 = vadd.f32 %v440_v23, %v439_v22  ;;  %v446_v38 = vmul.f32 %v931_v17, %v931_v17 }
 0x101   : > { %v425_v28 = vadd.f32 %v929_v16, %v424_v25  ;;  %v448_v30 = vadd.f32 %v447_v27, %v441_v24 }
 0x103   : > { %v426_v31 = vadd.f32 %v425_v28, %v927_v15  ;;  %v449_v33 = vadd.f32 %v448_v30, %v442_v26 }
 0x105   : > { %v427_v34 = vadd.f32 %v426_v31, %v935_v19  ;;  %v450_v36 = vadd.f32 %v449_v33, %v443_v29 }
 0x107   : > { %v428_v37 = vadd.f32 %v923_v13, %v427_v34  ;;  %v451_v39 = vadd.f32 %v450_v36, %v444_v32 }
 0x109   : > { %v429_v40 = vadd.f32 %v931_v17, %v428_v37  ;;  %v452_v41 = vadd.f32 %v451_v39, %v445_v35 }
 0x10b   : > { %v430_v42 = vrot.slane %v429_v40, 4  ;;  %v453_v43 = vadd.f32 %v452_v41, %v446_v38 }
 0x10d   : > { %v431_v44 = vadd.f32 %v430_v42, %v429_v40  ;;  %v454_v45 = vrot.slane %v453_v43, 4 }
 0x10f   : > { %v432_v46 = vrot.slane %v431_v44, 2  ;;  %v455_v47 = vadd.f32 %v454_v45, %v453_v43 }
 0x111   : > { %v433_v48 = vadd.f32 %v432_v46, %v431_v44  ;;  %v456_v49 = vrot.slane %v455_v47, 2 }
 0x113   : > { %v434_v50 = vrot.slane %v433_v48, 1  ;;  %v457_v51 = vadd.f32 %v456_v49, %v455_v47 }
 0x115   : > { %v435_v53 = vadd.f32 %v434_v50, %v433_v48  ;;  %v458_v54 = vrot.slane %v457_v51, 1 }
 0x117   : > { %v436_v56 = vadd.f32 %v435_v53, %v422_v52  ;;  %v459_v57 = vadd.f32 %v458_v54, %v457_v51 }
 0x119   : > { %437 = vst [vmem:[#allocation2] sm:$0x1] %v436_v56  ;;  %v460_v58 = vadd.f32 %v459_v57, %v438_v55 }
 0x11b   : > { %461 = vst [vmem:[#allocation3] sm:$0x1] %v460_v58 }
 0x11c PF: > { %p462_p8 = scmp.eq.s32.totalorder %s806_s15, 1 }
 0x11d   : > { %v474_v3 = vld [vmem:[%s1003_s2] sm:$0x1] (%p462_p8) }
 0x11e   : > { %466 = sbr.rel (!%p462_p8) target bundleno = 320 (0x140), region = 48  ;;  %v479_v6 = vld [vmem:[%s1004_s3] sm:$0x1] (%p462_p8) }
 0x120   : > { %v467_v59 = vld [vmem:[#allocation2] sm:$0x1] (%p462_p8) }
 0x121   : > { %v468_v61 = vmul.f32 (%p462_p8), 0.020408163, %v467_v59 }
 0x122   : > { %v469_v60 = vld [vmem:[#allocation3] sm:$0x1] (%p462_p8) }
 0x123   : > { %v470_v62 = vmul.f32 0.020408163, %v469_v60  ;;  %v471_v63 = vmul.f32 %v468_v61, %v468_v61 }
 0x125   : > { %v472_v0 = vsub.f32 %v470_v62, %v471_v63 }
 0x127   : > { %v473_v1 = vmax.f32 %v472_v0, 0.0 }
 0x129   : > { %v475_v2 = vadd.f32 1e-05, %v473_v1 }
 0x12b   : > { %782 = vrsqrt.f32 %v475_v2 }
 0x138   : > { %v783_v4 = vpop.eup %782 }
 0x139   : > { %v477_v5 = vmul.f32 %v783_v4, %v474_v3 }
 0x13b   : > { %478 = vst [vmem:[#allocation2] sm:$0x1] %v477_v5  ;;  %v480_v7 = vmul.f32 %v477_v5, %v468_v61 }
 0x13d   : > { %v481_v8 = vsub.f32 %v479_v6, %v480_v7 }
 0x13f   : > { %482 = vst [vmem:[#allocation3] sm:$0x1] %v481_v8 }
 0x140 PF: > { %p668_p9 = scmp.ne.s32.totalorder %s806_s15, 1 }
 0x142   : > { %485 = sbr.rel (%p668_p9) target bundleno = 341 (0x155), region = 52 }
 0x147   : > { %v669_v9 = vld [vmem:[#allocation2] ss:$0 sm:$0xff]  ;;  %v670_v10 = vld [vmem:[#allocation3] ss:$0 sm:$0xff] }
 0x148   : > { %v493_v11 = vmul.f32 %v669_v9, %v925_v14  ;;  %v494_v20 = vmul.f32 %v669_v9, %v933_v18  ;;  %v495_v21 = vmul.f32 %v921_v12, %v669_v9  ;;  %v496_v22 = vmul.f32 %v929_v16, %v669_v9 }
 0x149   : > { %v497_v23 = vmul.f32 %v669_v9, %v927_v15  ;;  %v498_v24 = vmul.f32 %v669_v9, %v935_v19  ;;  %v499_v25 = vmul.f32 %v923_v13, %v669_v9  ;;  %v500_v26 = vmul.f32 %v931_v17, %v669_v9 }
 0x14a   : > { %v508_v27 = vadd.f32 %v670_v10, %v493_v11  ;;  %v509_v28 = vadd.f32 %v670_v10, %v494_v20  ;;  %v510_v29 = vadd.f32 %v670_v10, %v495_v21  ;;  %v511_v30 = vadd.f32 %v670_v10, %v496_v22 }
 0x14b   : > { %v512_v31 = vadd.f32 %v670_v10, %v497_v23  ;;  %v513_v14 = vadd.f32 %v670_v10, %v498_v24  ;;  %v514_v18 = vadd.f32 %v670_v10, %v499_v25  ;;  %v515_v12 = vadd.f32 %v670_v10, %v500_v26 }
 0x14c   : > { %vm516_vm0 = vcmp.ge.f32.partialorder %v508_v27, 0.0  ;;  %v524_v16 = vmul.f32 0.2, %v508_v27  ;;  %vm517_vm1 = vcmp.ge.f32.partialorder %v509_v28, 0.0  ;;  %v525_v15 = vmul.f32 0.2, %v509_v28 }
 0x14d   : > { %vm518_vm2 = vcmp.ge.f32.partialorder %v510_v29, 0.0  ;;  %v526_v13 = vmul.f32 0.2, %v510_v29  ;;  %vm519_vm3 = vcmp.ge.f32.partialorder %v511_v30, 0.0  ;;  %v527_v17 = vmul.f32 0.2, %v511_v30 }
 0x14e   : > { %v532_v19 = vsel %vm516_vm0, %v508_v27, %v524_v16  ;;  %v533_v32 = vsel %vm517_vm1, %v509_v28, %v525_v15  ;;  %vm520_vm4 = vcmp.ge.f32.partialorder %v512_v31, 0.0  ;;  %v528_v33 = vmul.f32 0.2, %v512_v31 }
 0x14f   : > { %540 = vst [vmem:[%s899_s9] sm:$0xff] %v532_v19  ;;  %541 = vst [vmem:[%s899_s9 + $0x8] sm:$0xff] %v533_v32  ;;  %v534_v34 = vsel %vm518_vm2, %v510_v29, %v526_v13  ;;  %v535_v35 = vsel %vm519_vm3, %v511_v30, %v527_v17  ;;  %vm521_vm5 = vcmp.ge.f32.partialorder %v513_v14, 0.0  ;;  %v529_v36 = vmul.f32 0.2, %v513_v14 }
 0x150   : > { %542 = vst [vmem:[%s899_s9 + $0x10] sm:$0xff] %v534_v34  ;;  %543 = vst [vmem:[%s899_s9 + $0x18] sm:$0xff] %v535_v35  ;;  %v536_v37 = vsel %vm520_vm4, %v512_v31, %v528_v33  ;;  %vm522_vm6 = vcmp.ge.f32.partialorder %v514_v18, 0.0  ;;  %v530_v38 = vmul.f32 0.2, %v514_v18  ;;  %vm523_vm7 = vcmp.ge.f32.partialorder %v515_v12, 0.0 }
 0x151   : > { %544 = vst [vmem:[%s899_s9 + $0x20] sm:$0xff] %v536_v37  ;;  %v537_v39 = vsel %vm521_vm5, %v513_v14, %v529_v36  ;;  %v531_v40 = vmul.f32 0.2, %v515_v12 }
 0x152   : > { %545 = vst [vmem:[%s899_s9 + $0x28] sm:$0xff] %v537_v39  ;;  %v538_v41 = vsel %vm522_vm6, %v514_v18, %v530_v38 }
 0x153   : > { %546 = vst [vmem:[%s899_s9 + $0x30] sm:$0xff] %v538_v41  ;;  %v539_v42 = vsel %vm523_vm7, %v515_v12, %v531_v40 }
 0x154   : > { %547 = vst [vmem:[%s899_s9 + $0x38] sm:$0xff] %v539_v42 }
 0x155 PF: > { %s14_s19 = sadd.s32 1, %s822_s19   ;;  %s1006_s15 = smov %s814_s17 }
 0x156   : > { %p11_p10 = scmp.ge.s32.totalorder %s14_s19, 6   ;;  %s1007_s16 = smov %s818_s18 }
 0x157   : > { %s1008_s17 = smov %s1011_s20  ;;  %s1009_s18 = smov %s1015_s21 }
 0x158   :  { %13 = sbr.rel (!%p11_p10) target bundleno = 3 (0x3), region = 82 }

</bundles_post_ra>
